<compile_context>
chip_gen: v5e
topology: v5e:2x2
jax: 0.10.0
libtpu: 0.0.40
codegen_flags: <defaults>
</compile_context>

<pallas_src>
from functools import partial

import jax
import jax.numpy as jnp
from jax.experimental import pallas as pl
from jax.experimental.pallas import tpu as pltpu

BN_EPS = 1e-5

# Keep total planned VMEM under this when deciding to cache h1 (safe on v7x).
_H1_CACHE_VMEM_CAP = 48 << 20


def _round_up(n, m):
    return (n + m - 1) // m * m


def _cdiv(a, b):
    return -(-a // b)


def _pad2(a, rows, cols):
    return jnp.pad(a, ((0, rows - a.shape[0]), (0, cols - a.shape[1])))


def _vmem_bytes(B_p, K_p, H_p, O_p, batch_tile, itm, out_itm, cached):
    weights = 2 * (K_p * H_p + H_p * O_p) * itm        # double-buffered resident W1/W2
    vecs = 2 * (2 * H_p + O_p) * 4                     # gamma / beta / b2
    io_tiles = 2 * batch_tile * (K_p * itm + O_p * out_itm)  # x / out tiles (2-deep)
    stats = 4 * H_p * 4                                # sum / sumsq / scale / shift
    cache = B_p * H_p * 4 if cached else 0             # f32 h1 cache
    return weights + vecs + io_tiles + stats + cache


def _vmem_limit(need_bytes):
    # Explicit scoped-VMEM limit: big enough for the plan + headroom, clamped
    # to a value that is legal on every generation (v7x physical = 64 MiB).
    return int(min(max(need_bytes + (8 << 20), 32 << 20), 56 << 20))


# --------------------------------------------------------------------------
# Kernels
# --------------------------------------------------------------------------
def _mlp_single_kernel(x_ref, w1_ref, g1_ref, bt1_ref, w2_ref, b2_ref, o_ref,
                       *, inv_batch):
    """Whole padded batch in one tile: one pass, h1 computed exactly once."""
    h = jnp.dot(x_ref[...], w1_ref[...], preferred_element_type=jnp.float32)
    mean = jnp.sum(h, axis=0, keepdims=True) * inv_batch
    var = jnp.maximum(
        jnp.sum(h * h, axis=0, keepdims=True) * inv_batch - mean * mean, 0.0)
    scale = g1_ref[...] * jax.lax.rsqrt(var + BN_EPS)
    shift = bt1_ref[...] - mean * scale
    hn = jnp.maximum(h * scale + shift, 0.0)
    out = jnp.dot(hn.astype(w2_ref.dtype), w2_ref[...],
                  preferred_element_type=jnp.float32) + b2_ref[...]
    o_ref[...] = out.astype(o_ref.dtype)


def _mlp_two_phase_kernel(x_ref, w1_ref, g1_ref, bt1_ref, w2_ref, b2_ref, o_ref,
                          *scratch, inv_batch, use_cache):
    """grid = (phase, batch_tile).  Phase 0: stats (+ optional h1 cache).
    Phase 1: fused BN scale/shift + ReLU + Linear-2 + store."""
    if use_cache:
        h_cache, sum_ref, sq_ref, scale_ref, shift_ref = scratch
    else:
        sum_ref, sq_ref, scale_ref, shift_ref = scratch
        h_cache = None

    phase = pl.program_id(0)
    i = pl.program_id(1)
    last = pl.num_programs(1) - 1

    # ---------------- phase 0: full-batch BN statistics ----------------
    @pl.when(phase == 0)
    def _stats_phase():
        h = jnp.dot(x_ref[...], w1_ref[...], preferred_element_type=jnp.float32)

        @pl.when(i == 0)
        def _init():
            sum_ref[...] = jnp.zeros_like(sum_ref)
            sq_ref[...] = jnp.zeros_like(sq_ref)

        sum_ref[...] += jnp.sum(h, axis=0, keepdims=True)
        sq_ref[...] += jnp.sum(h * h, axis=0, keepdims=True)

        if use_cache:
            h_cache[i] = h            # persist h1 for phase 1 (f32)

        @pl.when(i == last)
        def _finalize():
            mean = sum_ref[...] * inv_batch
            var = jnp.maximum(sq_ref[...] * inv_batch - mean * mean, 0.0)
            scale = g1_ref[...] * jax.lax.rsqrt(var + BN_EPS)
            scale_ref[...] = scale
            shift_ref[...] = bt1_ref[...] - mean * scale

    # ------------- phase 1: normalize + ReLU + Linear-2 + store -------------
    @pl.when(phase == 1)
    def _apply_phase():
        if use_cache:
            h = h_cache[i]
        else:
            h = jnp.dot(x_ref[...], w1_ref[...],
                        preferred_element_type=jnp.float32)
        hn = jnp.maximum(h * scale_ref[...] + shift_ref[...], 0.0)
        out = jnp.dot(hn.astype(w2_ref.dtype), w2_ref[...],
                      preferred_element_type=jnp.float32) + b2_ref[...]
        o_ref[...] = out.astype(o_ref.dtype)


# --------------------------------------------------------------------------
# Wrapper
# --------------------------------------------------------------------------
def mlp_forward(x, w1, b1, g1, bt1, w2, b2, *,
                mxu_dtype=jnp.bfloat16, out_dtype=jnp.float32,
                batch_tile=None, h1_cache_budget_bytes=_H1_CACHE_VMEM_CAP):
    """x: (B, in); w1: (in, hidden); w2: (hidden, out); biases/affine (1, dim)."""
    B, K = x.shape
    H = w1.shape[1]
    O = w2.shape[1]
    del b1  # cancelled exactly by BatchNorm mean subtraction (see header)

    # Lane-pad feature dims to 128 (lane-dense vregs + unmasked stores).
    K_p = _round_up(K, 128)
    H_p = _round_up(H, 128)
    O_p = _round_up(O, 128)

    # Batch tile: whole batch when small (single-pass fast path), otherwise
    # ~512-row tiles (MXU-filling on v6e/v7x), always a multiple of 16.
    if batch_tile is None:
        if B <= 512:
            batch_tile = _round_up(B, 16)
        else:
            n_tiles = _cdiv(B, 512)
            batch_tile = _round_up(_cdiv(B, n_tiles), 16)
    else:
        batch_tile = _round_up(batch_tile, 16)
    B_p = _round_up(B, batch_tile)
    nbt = B_p // batch_tile

    x_p = _pad2(x.astype(mxu_dtype), B_p, K_p)
    w1_p = _pad2(w1.astype(mxu_dtype), K_p, H_p)
    w2_p = _pad2(w2.astype(mxu_dtype), H_p, O_p)
    g1_p = _pad2(g1.astype(jnp.float32), 1, H_p)
    bt1_p = _pad2(bt1.astype(jnp.float32), 1, H_p)
    b2_p = _pad2(b2.astype(jnp.float32), 1, O_p)
    args = (x_p, w1_p, g1_p, bt1_p, w2_p, b2_p)

    itm = jnp.dtype(mxu_dtype).itemsize
    out_itm = jnp.dtype(out_dtype).itemsize
    inv_batch = float(1.0 / B)
    weight_bytes = K_p * H_p * itm + H_p * O_p * itm + (2 * H_p + O_p) * 4

    # ----------------------- single-pass fast path -----------------------
    if nbt == 1:
        need = _vmem_bytes(B_p, K_p, H_p, O_p, B_p, itm, out_itm, cached=False)
        cost = pl.CostEstimate(
            flops=2 * B_p * H_p * (K_p + O_p),
            transcendentals=H_p,
            bytes_accessed=B_p * K_p * itm + weight_bytes + B_p * O_p * out_itm)
        out_p = pl.pallas_call(
            partial(_mlp_single_kernel, inv_batch=inv_batch),
            out_shape=jax.ShapeDtypeStruct((B_p, O_p), out_dtype),
            grid_spec=pltpu.PrefetchScalarGridSpec(
                num_scalar_prefetch=0,
                grid=(1,),
                in_specs=[
                    pl.BlockSpec((B_p, K_p), lambda i: (0, 0)),   # x
                    pl.BlockSpec((K_p, H_p), lambda i: (0, 0)),   # W1
                    pl.BlockSpec((1, H_p), lambda i: (0, 0)),     # gamma
                    pl.BlockSpec((1, H_p), lambda i: (0, 0)),     # beta
                    pl.BlockSpec((H_p, O_p), lambda i: (0, 0)),   # W2
                    pl.BlockSpec((1, O_p), lambda i: (0, 0)),     # b2
                ],
                out_specs=pl.BlockSpec((B_p, O_p), lambda i: (0, 0))),
            compiler_params=pltpu.CompilerParams(
                dimension_semantics=("arbitrary",),
                vmem_limit_bytes=_vmem_limit(need)),
            cost_estimate=cost,
        )(*args)
        return out_p[:B, :O]

    # ------------------------- two-phase path -------------------------
    use_cache = (_vmem_bytes(B_p, K_p, H_p, O_p, batch_tile, itm, out_itm,
                             cached=True) <= h1_cache_budget_bytes)
    need = _vmem_bytes(B_p, K_p, H_p, O_p, batch_tile, itm, out_itm,
                       cached=use_cache)

    if use_cache:
        # Phase 1 never reads x: keep its block index constant so no new x
        # DMAs are issued after the stats sweep.
        x_map = lambda p, i: (i * (1 - p), 0)
        flops = 2 * B_p * H_p * (K_p + O_p)
        x_bytes = B_p * K_p * itm
    else:
        x_map = lambda p, i: (i, 0)
        flops = 2 * B_p * H_p * (2 * K_p + O_p)
        x_bytes = 2 * B_p * K_p * itm

    cost = pl.CostEstimate(
        flops=flops,
        transcendentals=H_p,
        bytes_accessed=x_bytes + weight_bytes + B_p * O_p * out_itm)

    scratch = [
        pltpu.VMEM((1, H_p), jnp.float32),   # sum(h)
        pltpu.VMEM((1, H_p), jnp.float32),   # sum(h*h)
        pltpu.VMEM((1, H_p), jnp.float32),   # fused BN scale
        pltpu.VMEM((1, H_p), jnp.float32),   # fused BN shift
    ]
    if use_cache:
        scratch = [pltpu.VMEM((nbt, batch_tile, H_p), jnp.float32)] + scratch

    out_p = pl.pallas_call(
        partial(_mlp_two_phase_kernel, inv_batch=inv_batch, use_cache=use_cache),
        out_shape=jax.ShapeDtypeStruct((B_p, O_p), out_dtype),
        grid_spec=pltpu.PrefetchScalarGridSpec(
            num_scalar_prefetch=0,
            grid=(2, nbt),                                   # (phase, batch tile)
            in_specs=[
                pl.BlockSpec((batch_tile, K_p), x_map),              # x
                pl.BlockSpec((K_p, H_p), lambda p, i: (0, 0)),       # W1
                pl.BlockSpec((1, H_p), lambda p, i: (0, 0)),         # gamma
                pl.BlockSpec((1, H_p), lambda p, i: (0, 0)),         # beta
                pl.BlockSpec((H_p, O_p), lambda p, i: (0, 0)),       # W2
                pl.BlockSpec((1, O_p), lambda p, i: (0, 0)),         # b2
            ],
            # Constant block index during phase 0 => no output writeback until
            # phase 1 actually produces data (each block is written exactly
            # once, in contiguous visits).
            out_specs=pl.BlockSpec((batch_tile, O_p), lambda p, i: (i * p, 0)),
            scratch_shapes=scratch),
        compiler_params=pltpu.CompilerParams(
            # Batch axis carries the cross-tile BN stats reduction and the
            # phase axis is a strict two-pass dependency -> both sequential.
            # TODO(synk): v7x dual-TensorCore split (per-core partial stats +
            # cross-core combine) not implemented; single-TC on all gens.
            dimension_semantics=("arbitrary", "arbitrary"),
            vmem_limit_bytes=_vmem_limit(need)),
        cost_estimate=cost,
    )(*args)
    return out_p[:B, :O]


# --------------------------------------------------------------------------
# References
# --------------------------------------------------------------------------
def reference_pytorch(x, w1, b1, g1, bt1, w2, b2):
    """Literal f32 translation of the PyTorch module (train-mode BatchNorm)."""
    h = x @ w1 + b1
    mean = jnp.mean(h, axis=0, keepdims=True)
    var = jnp.mean((h - mean) ** 2, axis=0, keepdims=True)
    h = (h - mean) * jax.lax.rsqrt(var + BN_EPS)
    h = h * g1 + bt1
    h = jnp.maximum(h, 0.0)
    return h @ w2 + b2


def reference_mirrored(x, w1, g1, bt1, w2, b2, mxu_dtype):
    """Reference mirroring the kernel's dtype policy (low-precision MXU, f32 BN)."""
    h = jnp.dot(x.astype(mxu_dtype), w1.astype(mxu_dtype),
                preferred_element_type=jnp.float32)
    mean = jnp.mean(h, axis=0, keepdims=True)
    var = jnp.maximum(jnp.mean(h * h, axis=0, keepdims=True) - mean * mean, 0.0)
    scale = g1 * jax.lax.rsqrt(var + BN_EPS)
    shift = bt1 - mean * scale
    h = jnp.maximum(h * scale + shift, 0.0)
    return (jnp.dot(h.astype(mxu_dtype), w2.astype(mxu_dtype),
                    preferred_element_type=jnp.float32) + b2)


if __name__ == "__main__":
    # MLP(input_dim=16, hidden_dim=32, output_dim=8, num_hidden_layers=1)
    batch, input_dim, hidden_dim, output_dim = 8, 16, 32, 8

    key = jax.random.PRNGKey(0)
    kx, kw1, kb1, kw2, kb2, kx2 = jax.random.split(key, 6)

    x = jax.random.normal(kx, (batch, input_dim), dtype=jnp.float32)

    # Mimic PyTorch's uniform(-1/sqrt(fan_in), 1/sqrt(fan_in)) init.
    bound1 = 1.0 / jnp.sqrt(input_dim)
    w1 = jax.random.uniform(kw1, (input_dim, hidden_dim), jnp.float32, -bound1, bound1)
    b1 = jax.random.uniform(kb1, (1, hidden_dim), jnp.float32, -bound1, bound1)

    bound2 = 1.0 / jnp.sqrt(hidden_dim)
    w2 = jax.random.uniform(kw2, (hidden_dim, output_dim), jnp.float32, -bound2, bound2)
    b2 = jax.random.uniform(kb2, (1, output_dim), jnp.float32, -bound2, bound2)

    # BatchNorm1d affine params at init: gamma=1, beta=0.
    g1 = jnp.ones((1, hidden_dim), jnp.float32)
    bt1 = jnp.zeros((1, hidden_dim), jnp.float32)

    ref_f32 = reference_pytorch(x, w1, b1, g1, bt1, w2, b2)

    # --- Single-pass fast path (whole batch in one tile) ---
    out_f32 = jax.block_until_ready(
        mlp_forward(x, w1, b1, g1, bt1, w2, b2, mxu_dtype=jnp.float32))
    assert out_f32.shape == (batch, output_dim)
    assert jnp.allclose(out_f32, ref_f32, atol=2e-3, rtol=2e-3)

    out_bf16 = jax.block_until_ready(
        mlp_forward(x, w1, b1, g1, bt1, w2, b2, mxu_dtype=jnp.bfloat16))
    ref_bf16 = reference_mirrored(x, w1, g1, bt1, w2, b2, jnp.bfloat16)
    assert out_bf16.shape == (batch, output_dim)
    assert jnp.allclose(out_bf16, ref_bf16, atol=2e-3, rtol=2e-3)
    assert jnp.allclose(out_bf16, ref_f32, atol=5e-2, rtol=5e-2)

    # --- Two-phase multi-tile path (forced small tile to exercise it) ---
    batch2 = 40
    x2 = jax.random.normal(kx2, (batch2, input_dim), dtype=jnp.float32)
    ref2 = reference_pytorch(x2, w1, b1, g1, bt1, w2, b2)

    out2_cached = jax.block_until_ready(
        mlp_forward(x2, w1, b1, g1, bt1, w2, b2,
                    mxu_dtype=jnp.float32, batch_tile=16))          # h1 cached
    assert out2_cached.shape == (batch2, output_dim)
    assert jnp.allclose(out2_cached, ref2, atol=2e-3, rtol=2e-3)

    out2_recomp = jax.block_until_ready(
        mlp_forward(x2, w1, b1, g1, bt1, w2, b2,
                    mxu_dtype=jnp.float32, batch_tile=16,
                    h1_cache_budget_bytes=0))                        # recompute path
    assert jnp.allclose(out2_recomp, ref2, atol=2e-3, rtol=2e-3)

    out2_bf16 = jax.block_until_ready(
        mlp_forward(x2, w1, b1, g1, bt1, w2, b2,
                    mxu_dtype=jnp.bfloat16, batch_tile=16))
    assert jnp.allclose(out2_bf16, ref2, atol=5e-2, rtol=5e-2)

    print("KERNEL_OK")
</pallas_src>

<mosaic_0001>
module attributes {stable_mosaic.version = 11 : i64} {
  func.func @_mlp_single_kernel(%arg0: i32, %arg1: memref<16x128xf32, #tpu.memory_space<vmem>>, %arg2: memref<128x128xf32, #tpu.memory_space<vmem>>, %arg3: memref<1x128xf32, #tpu.memory_space<vmem>>, %arg4: memref<1x128xf32, #tpu.memory_space<vmem>>, %arg5: memref<128x128xf32, #tpu.memory_space<vmem>>, %arg6: memref<1x128xf32, #tpu.memory_space<vmem>>, %arg7: memref<16x128xf32, #tpu.memory_space<vmem>>) attributes {dimension_semantics = [#tpu.dimension_semantics<arbitrary>], iteration_bounds = array<i64: 1>, scalar_prefetch = 0 : i64, scratch_operands = 0 : i64, tpu.core_type = #tpu.core_type<tc>, window_params = [{pipeline_mode = #tpu.pipeline_mode<synchronous>, transform_indices = @transform_0, window_bounds = array<i64: 16, 128>}, {pipeline_mode = #tpu.pipeline_mode<synchronous>, transform_indices = @transform_1, window_bounds = array<i64: 128, 128>}, {pipeline_mode = #tpu.pipeline_mode<synchronous>, transform_indices = @transform_2, window_bounds = array<i64: 1, 128>}, {pipeline_mode = #tpu.pipeline_mode<synchronous>, transform_indices = @transform_3, window_bounds = array<i64: 1, 128>}, {pipeline_mode = #tpu.pipeline_mode<synchronous>, transform_indices = @transform_4, window_bounds = array<i64: 128, 128>}, {pipeline_mode = #tpu.pipeline_mode<synchronous>, transform_indices = @transform_5, window_bounds = array<i64: 1, 128>}, {pipeline_mode = #tpu.pipeline_mode<synchronous>, transform_indices = @transform_6, window_bounds = array<i64: 16, 128>}]} {
    %c0 = arith.constant 0 : index
    %c0_0 = arith.constant 0 : index
    %0 = vector.load %arg1[%c0, %c0_0] : memref<16x128xf32, #tpu.memory_space<vmem>>, vector<16x128xf32>
    %c0_1 = arith.constant 0 : index
    %c0_2 = arith.constant 0 : index
    %1 = vector.load %arg2[%c0_1, %c0_2] : memref<128x128xf32, #tpu.memory_space<vmem>>, vector<128x128xf32>
    %cst = arith.constant dense<0.000000e+00> : vector<16x128xf32>
    %2 = tpu.matmul %0, %1, %cst {dimension_numbers = #tpu.dot_dimension_numbers<[1], [0], [0], [1], [0, 0, 1, 1], [], []>} : vector<16x128xf32>, vector<128x128xf32>, vector<16x128xf32> -> vector<16x128xf32>
    %cst_3 = arith.constant dense<0.000000e+00> : vector<128xf32>
    %3 = vector.multi_reduction <add>, %2, %cst_3 [0] : vector<16x128xf32> to vector<128xf32>
    %4 = vector.shape_cast %3 : vector<128xf32> to vector<1x128xf32>
    %cst_4 = arith.constant 1.250000e-01 : f32
    %5 = vector.broadcast %cst_4 : f32 to vector<1x128xf32>
    %6 = arith.mulf %4, %5 : vector<1x128xf32>
    %7 = arith.mulf %2, %2 : vector<16x128xf32>
    %cst_5 = arith.constant dense<0.000000e+00> : vector<128xf32>
    %8 = vector.multi_reduction <add>, %7, %cst_5 [0] : vector<16x128xf32> to vector<128xf32>
    %9 = vector.shape_cast %8 : vector<128xf32> to vector<1x128xf32>
    %cst_6 = arith.constant 1.250000e-01 : f32
    %10 = vector.broadcast %cst_6 : f32 to vector<1x128xf32>
    %11 = arith.mulf %9, %10 : vector<1x128xf32>
    %12 = arith.mulf %6, %6 : vector<1x128xf32>
    %13 = arith.subf %11, %12 : vector<1x128xf32>
    %cst_7 = arith.constant 0.000000e+00 : f32
    %14 = vector.broadcast %cst_7 : f32 to vector<1x128xf32>
    %15 = arith.maximumf %13, %14 : vector<1x128xf32>
    %c0_8 = arith.constant 0 : index
    %c0_9 = arith.constant 0 : index
    %16 = vector.load %arg3[%c0_8, %c0_9] : memref<1x128xf32, #tpu.memory_space<vmem>>, vector<1x128xf32>
    %cst_10 = arith.constant 9.99999974E-6 : f32
    %17 = vector.broadcast %cst_10 : f32 to vector<1x128xf32>
    %18 = arith.addf %15, %17 : vector<1x128xf32>
    %19 = math.rsqrt %18 : vector<1x128xf32>
    %20 = arith.mulf %16, %19 : vector<1x128xf32>
    %c0_11 = arith.constant 0 : index
    %c0_12 = arith.constant 0 : index
    %21 = vector.load %arg4[%c0_11, %c0_12] : memref<1x128xf32, #tpu.memory_space<vmem>>, vector<1x128xf32>
    %22 = arith.mulf %6, %20 : vector<1x128xf32>
    %23 = arith.subf %21, %22 : vector<1x128xf32>
    %24 = vector.broadcast %20 : vector<1x128xf32> to vector<16x128xf32>
    %25 = arith.mulf %2, %24 : vector<16x128xf32>
    %26 = vector.broadcast %23 : vector<1x128xf32> to vector<16x128xf32>
    %27 = arith.addf %25, %26 : vector<16x128xf32>
    %cst_13 = arith.constant 0.000000e+00 : f32
    %28 = vector.broadcast %cst_13 : f32 to vector<16x128xf32>
    %29 = arith.maximumf %27, %28 : vector<16x128xf32>
    %c0_14 = arith.constant 0 : index
    %c0_15 = arith.constant 0 : index
    %30 = vector.load %arg5[%c0_14, %c0_15] : memref<128x128xf32, #tpu.memory_space<vmem>>, vector<128x128xf32>
    %cst_16 = arith.constant dense<0.000000e+00> : vector<16x128xf32>
    %31 = tpu.matmul %29, %30, %cst_16 {dimension_numbers = #tpu.dot_dimension_numbers<[1], [0], [0], [1], [0, 0, 1, 1], [], []>} : vector<16x128xf32>, vector<128x128xf32>, vector<16x128xf32> -> vector<16x128xf32>
    %c0_17 = arith.constant 0 : index
    %c0_18 = arith.constant 0 : index
    %32 = vector.load %arg6[%c0_17, %c0_18] : memref<1x128xf32, #tpu.memory_space<vmem>>, vector<1x128xf32>
    %33 = vector.broadcast %32 : vector<1x128xf32> to vector<16x128xf32>
    %34 = arith.addf %31, %33 : vector<16x128xf32>
    %c0_19 = arith.constant 0 : index
    %c0_20 = arith.constant 0 : index
    %35 = vector.load %arg7[%c0_19, %c0_20] : memref<16x128xf32, #tpu.memory_space<vmem>>, vector<16x128xf32>
    tpu.vector_store %arg7[%c0_19, %c0_20], %34 {strides = array<i32>} : memref<16x128xf32, #tpu.memory_space<vmem>>, vector<16x128xf32>,
    return
  }
  func.func @transform_0(%arg0: i32) -> (i32, i32) {
    %c0_i32 = arith.constant 0 : i32
    %c0_i32_0 = arith.constant 0 : i32
    %c0_i32_1 = arith.constant 0 : i32
    return %c0_i32, %c0_i32_0 : i32, i32
  }
  func.func @transform_1(%arg0: i32) -> (i32, i32) {
    %c0_i32 = arith.constant 0 : i32
    %c0_i32_0 = arith.constant 0 : i32
    %c0_i32_1 = arith.constant 0 : i32
    return %c0_i32, %c0_i32_0 : i32, i32
  }
  func.func @transform_2(%arg0: i32) -> (i32, i32) {
    %c0_i32 = arith.constant 0 : i32
    %c0_i32_0 = arith.constant 0 : i32
    %c0_i32_1 = arith.constant 0 : i32
    return %c0_i32, %c0_i32_0 : i32, i32
  }
  func.func @transform_3(%arg0: i32) -> (i32, i32) {
    %c0_i32 = arith.constant 0 : i32
    %c0_i32_0 = arith.constant 0 : i32
    %c0_i32_1 = arith.constant 0 : i32
    return %c0_i32, %c0_i32_0 : i32, i32
  }
  func.func @transform_4(%arg0: i32) -> (i32, i32) {
    %c0_i32 = arith.constant 0 : i32
    %c0_i32_0 = arith.constant 0 : i32
    %c0_i32_1 = arith.constant 0 : i32
    return %c0_i32, %c0_i32_0 : i32, i32
  }
  func.func @transform_5(%arg0: i32) -> (i32, i32) {
    %c0_i32 = arith.constant 0 : i32
    %c0_i32_0 = arith.constant 0 : i32
    %c0_i32_1 = arith.constant 0 : i32
    return %c0_i32, %c0_i32_0 : i32, i32
  }
  func.func @transform_6(%arg0: i32) -> (i32, i32) {
    %c0_i32 = arith.constant 0 : i32
    %c0_i32_0 = arith.constant 0 : i32
    %c0_i32_1 = arith.constant 0 : i32
    return %c0_i32, %c0_i32_0 : i32, i32
  }
}

</mosaic_0001>

<bundles_post_ra>
// kernel: tpu_custom_call.1
= control target key start
LH: loop header
LB: loop body
LE: loop exit
PB: predicated region body
PF: predicated region fallthrough
CT: control target
= control target key end

     0   :  { %11 = vsyncpa [#allocation3], 0  ;;  %s455_s0 = inlined_call_operand.hbm [shape: f32[16,128], index: 0, kind: input, shape index: {}]   ;;  %s456_s1 = inlined_call_operand.hbm [shape: f32[128,128], index: 1, kind: input, shape index: {}]   ;;  %s457_s2 = inlined_call_operand.vmem [shape: f32[1,128], index: 2, kind: input, shape index: {}]   ;;  %s458_s3 = inlined_call_operand.vmem [shape: f32[1,128], index: 3, kind: input, shape index: {}]   ;;  %s459_s4 = inlined_call_operand.hbm [shape: f32[128,128], index: 4, kind: input, shape index: {}]   ;;  %s460_s5 = inlined_call_operand.vmem [shape: f32[1,128], index: 5, kind: input, shape index: {}]   ;;  %s461_s6 = inlined_call_operand.hbm [shape: f32[16,128], index: 6, kind: output, shape index: {}]  }
   0x1   :  { %12 = vsyncpa [#allocation6], 0 }
   0x2   :  { %13 = vsyncpa [#allocation4], 0  ;;  %s31_s23 = sshll.u32 %s456_s1, 4  ;;  %s369_s24 = smov [#allocation5]   ;;  %s32_s23 = int_to_ptr.hbm [resolvable:$true] %s31_s23 }
   0x3   :  { %s33_s25 = sshll.u32 %s369_s24, 4  ;;  %s18_s28 = sshll.u32 %s455_s0, 4  ;;  %s34_s25 = int_to_ptr.vmem [resolvable:$true] %s33_s25  ;;  %s19_s28 = int_to_ptr.hbm [resolvable:$true] %s18_s28 }
   0x4   :  { %s370_s29 = smov 128   ;;  %s371_s30 = smov 8  }
   0x5   :  { %39 = dma.hbm_to_vmem [thread:$0]  %s32_s23, 2048, %s34_s25, [#allocation6], %s370_s29, %s370_s29, %s371_s30  }
   0x6   :  { %s372_s7 = smov [#allocation2]   ;;  %s48_s1 = sshll.u32 %s459_s4, 4  ;;  %s49_s1 = int_to_ptr.hbm [resolvable:$true] %s48_s1 }
   0x7   :  { %s20_s8 = sshll.u32 %s372_s7, 4  ;;  %s373_s0 = smov [#allocation7]   ;;  %s21_s8 = int_to_ptr.vmem [resolvable:$true] %s20_s8 }
   0x8   :  { %26 = dma.hbm_to_vmem [thread:$0]  %s19_s28, 256, %s21_s8, [#allocation3], %s370_s29, %s370_s29, %s371_s30  }
   0x9   :  { %s50_s11 = sshll.u32 %s373_s0, 4  ;;  %s51_s11 = int_to_ptr.vmem [resolvable:$true] %s50_s11 }
   0xa   :  { %56 = dma.hbm_to_vmem [thread:$0]  %s49_s1, 2048, %s51_s11, [#allocation6], %s370_s29, %s370_s29, %s371_s30  }
   0xb   :  { %363 = dma.done.wait [#allocation3], 256  }
   0xc   :  { %364 = vsyncadd [#allocation3], 4294967040 }
   0xd   :  { %365 = dma.done.wait [#allocation6], 4096  }
   0xe   :  { %366 = vsyncadd [#allocation6], 4294963200  ;;  %v88_v0 = vld [vmem:[#allocation5 + $0x78] sm:$0xff]  ;;  %v87_v1 = vld [vmem:[#allocation5 + $0x70] sm:$0xff]  ;;  %s212_s19 = sshll.u32 %s461_s6, 4  ;;  %s213_s19 = int_to_ptr.hbm [resolvable:$true] %s212_s19 }
   0xf   :  { %226 = vmatpush.msra.mxu2 %v88_v0  ;;  %89 = vmatpush.msra.mxu0 %v88_v0  ;;  %v86_v2 = vld [vmem:[#allocation5 + $0x68] sm:$0xff]  ;;  %v85_v3 = vld [vmem:[#allocation5 + $0x60] sm:$0xff]  ;;  %v84_v4 = vld [vmem:[#allocation5 + $0x58] sm:$0xff] }
  0x10   :  { %v83_v5 = vld [vmem:[#allocation5 + $0x50] sm:$0xff]  ;;  %v82_v6 = vld [vmem:[#allocation5 + $0x48] sm:$0xff]  ;;  %v81_v7 = vld [vmem:[#allocation5 + $0x40] sm:$0xff] }
  0x11   :  { %227 = vmatpush.msra.mxu2 %v87_v1  ;;  %90 = vmatpush.msra.mxu0 %v87_v1  ;;  %v80_v8 = vld [vmem:[#allocation5 + $0x38] sm:$0xff]  ;;  %v79_v9 = vld [vmem:[#allocation5 + $0x30] sm:$0xff]  ;;  %v78_v10 = vld [vmem:[#allocation5 + $0x28] sm:$0xff] }
  0x12   :  { %v77_v11 = vld [vmem:[#allocation5 + $0x20] sm:$0xff]  ;;  %v76_v12 = vld [vmem:[#allocation5 + $0x18] sm:$0xff]  ;;  %v75_v13 = vld [vmem:[#allocation5 + $0x10] sm:$0xff] }
  0x13   :  { %228 = vmatpush.msra.mxu2 %v86_v2  ;;  %91 = vmatpush.msra.mxu0 %v86_v2  ;;  %v74_v14 = vld [vmem:[#allocation5 + $0x8] sm:$0xff]  ;;  %v73_v15 = vld [vmem:[#allocation5] sm:$0xff]  ;;  %v72_v16 = vld [vmem:[#allocation2 + $0x8] sm:$0xff] }
  0x14   :  { %v71_v17 = vld [vmem:[#allocation2] sm:$0xff]  ;;  %v176_v18 = vld [vmem:[#allocation7 + $0x78] sm:$0xff]  ;;  %v174_v20 = vld [vmem:[#allocation7 + $0x68] sm:$0xff] }
  0x15   :  { %229 = vmatpush.msra.mxu2 %v85_v3  ;;  %92 = vmatpush.msra.mxu0 %v85_v3  ;;  %v175_v19 = vld [vmem:[#allocation7 + $0x70] sm:$0xff]  ;;  %v173_v22 = vld [vmem:[#allocation7 + $0x60] sm:$0xff]  ;;  %v172_v24 = vld [vmem:[#allocation7 + $0x58] sm:$0xff] }
  0x16   :  { %181 = vmatpush.msra.mxu1 %v176_v18  ;;  %242 = vmatpush.msra.mxu3 %v176_v18  ;;  %v171_v28 = vld [vmem:[#allocation7 + $0x50] sm:$0xff]  ;;  %v170_v31 = vld [vmem:[#allocation7 + $0x48] sm:$0xff]  ;;  %v169_v34 = vld [vmem:[#allocation7 + $0x40] sm:$0xff] }
  0x17   :  { %230 = vmatpush.msra.mxu2 %v84_v4  ;;  %93 = vmatpush.msra.mxu0 %v84_v4  ;;  %v168_v37 = vld [vmem:[#allocation7 + $0x38] sm:$0xff]  ;;  %v167_v40 = vld [vmem:[#allocation7 + $0x30] sm:$0xff]  ;;  %v166_v43 = vld [vmem:[#allocation7 + $0x28] sm:$0xff] }
  0x18   :  { %182 = vmatpush.msra.mxu1 %v175_v19  ;;  %243 = vmatpush.msra.mxu3 %v175_v19  ;;  %v165_v46 = vld [vmem:[#allocation7 + $0x20] sm:$0xff]  ;;  %v164_v49 = vld [vmem:[#allocation7 + $0x18] sm:$0xff]  ;;  %v163_v50 = vld [vmem:[#allocation7 + $0x10] sm:$0xff] }
  0x19   :  { %231 = vmatpush.msra.mxu2 %v83_v5  ;;  %94 = vmatpush.msra.mxu0 %v83_v5  ;;  %v162_v53 = vld [vmem:[#allocation7 + $0x8] sm:$0xff]  ;;  %v161_v55 = vld [vmem:[#allocation7] sm:$0xff]  ;;  %v133_v63 = vld [vmem:[%s457_s2] sm:$0x1] }
  0x1a   :  { %183 = vmatpush.msra.mxu1 %v174_v20  ;;  %244 = vmatpush.msra.mxu3 %v174_v20  ;;  %v146_v3 = vld [vmem:[%s458_s3] sm:$0x1]  ;;  %s374_s3 = smov [#allocation8]  }
  0x1b   :  { %232 = vmatpush.msra.mxu2 %v82_v6  ;;  %95 = vmatpush.msra.mxu0 %v82_v6  ;;  %s210_s16 = sshll.u32 %s374_s3, 4  ;;  %s211_s16 = int_to_ptr.vmem [resolvable:$true] %s210_s16 }
  0x1c   :  { %184 = vmatpush.msra.mxu1 %v173_v22  ;;  %245 = vmatpush.msra.mxu3 %v173_v22 }
  0x1d   :  { %233 = vmatpush.msra.mxu2 %v81_v7  ;;  %96 = vmatpush.msra.mxu0 %v81_v7 }
  0x1e   :  { %185 = vmatpush.msra.mxu1 %v172_v24  ;;  %246 = vmatpush.msra.mxu3 %v172_v24 }
  0x1f   :  { %234 = vmatpush.msra.mxu2 %v80_v8  ;;  %97 = vmatpush.msra.mxu0 %v80_v8 }
  0x20   :  { %186 = vmatpush.msra.mxu1 %v171_v28  ;;  %247 = vmatpush.msra.mxu3 %v171_v28 }
  0x21   :  { %235 = vmatpush.msra.mxu2 %v79_v9  ;;  %98 = vmatpush.msra.mxu0 %v79_v9 }
  0x22   :  { %187 = vmatpush.msra.mxu1 %v170_v31  ;;  %248 = vmatpush.msra.mxu3 %v170_v31 }
  0x23   :  { %236 = vmatpush.msra.mxu2 %v78_v10  ;;  %99 = vmatpush.msra.mxu0 %v78_v10 }
  0x24   :  { %188 = vmatpush.msra.mxu1 %v169_v34  ;;  %249 = vmatpush.msra.mxu3 %v169_v34 }
  0x25   :  { %237 = vmatpush.msra.mxu2 %v77_v11  ;;  %100 = vmatpush.msra.mxu0 %v77_v11 }
  0x26   :  { %189 = vmatpush.msra.mxu1 %v168_v37  ;;  %250 = vmatpush.msra.mxu3 %v168_v37 }
  0x27   :  { %238 = vmatpush.msra.mxu2 %v76_v12  ;;  %101 = vmatpush.msra.mxu0 %v76_v12 }
  0x28   :  { %190 = vmatpush.msra.mxu1 %v167_v40  ;;  %251 = vmatpush.msra.mxu3 %v167_v40 }
  0x29   :  { %239 = vmatpush.msra.mxu2 %v75_v13  ;;  %102 = vmatpush.msra.mxu0 %v75_v13 }
  0x2a   :  { %191 = vmatpush.msra.mxu1 %v166_v43  ;;  %252 = vmatpush.msra.mxu3 %v166_v43 }
  0x2b   :  { %240 = vmatpush.msra.mxu2 %v74_v14  ;;  %103 = vmatpush.msra.mxu0 %v74_v14  ;;  %v264_v14 = vld [vmem:[%s460_s5] ss:$0 sm:$0xff] }
  0x2c   :  { %192 = vmatpush.msra.mxu1 %v165_v46  ;;  %253 = vmatpush.msra.mxu3 %v165_v46 }
  0x2d   :  { %241 = vmatpush.msra.mxu2 %v73_v15  ;;  %104 = vmatpush.msra.mxu0 %v73_v15 }
  0x2e   :  { %108 = vmatmul.f32.vlgmr.msra.gmra.mxu2 %v72_v16  ;;  %105 = vmatmul.f32.vlgmr.msra.gmra.mxu0 %v71_v17 }
  0x2f   :  { %193 = vmatpush.msra.mxu1 %v164_v49  ;;  %254 = vmatpush.msra.mxu3 %v164_v49 }
  0x31   :  { %194 = vmatpush.msra.mxu1 %v163_v50  ;;  %255 = vmatpush.msra.mxu3 %v163_v50 }
  0x33   :  { %195 = vmatpush.msra.mxu1 %v162_v53  ;;  %256 = vmatpush.msra.mxu3 %v162_v53 }
  0x35   :  { %196 = vmatpush.msra.mxu1 %v161_v55  ;;  %257 = vmatpush.msra.mxu3 %v161_v55 }
  0xab   :  { %v428_v21 = vpop.f32.mrf.mxu0 }
  0xac   :  { %v120_v23 = vmul.f32 %v428_v21, %v428_v21 }
  0xb1   :  { %v432_v25 = vpop.f32.mrf.mxu2 }
  0xb2   :  { %v112_v26 = vadd.f32 %v432_v25, %v428_v21  ;;  %v121_v27 = vmul.f32 %v432_v25, %v432_v25 }
  0xb4   :  { %v113_v29 = vrot.slane %v112_v26, 4  ;;  %v122_v30 = vadd.f32 %v121_v27, %v120_v23 }
  0xb6   :  { %v114_v32 = vadd.f32 %v113_v29, %v112_v26  ;;  %v123_v33 = vrot.slane %v122_v30, 4 }
  0xb8   :  { %v115_v35 = vrot.slane %v114_v32, 2  ;;  %v124_v36 = vadd.f32 %v123_v33, %v122_v30 }
  0xba   :  { %v116_v38 = vadd.f32 %v115_v35, %v114_v32  ;;  %v125_v39 = vrot.slane %v124_v36, 2 }
  0xbc   :  { %v117_v41 = vrot.slane %v116_v38, 1  ;;  %v126_v42 = vadd.f32 %v125_v39, %v124_v36 }
  0xbe   :  { %v118_v44 = vadd.f32 %v117_v41, %v116_v38  ;;  %v127_v45 = vrot.slane %v126_v42, 1 }
  0xc0   :  { %v119_v47 = vmul.f32 0.125, %v118_v44  ;;  %v128_v48 = vadd.f32 %v127_v45, %v126_v42 }
  0xc2   :  { %v129_v51 = vmul.f32 0.125, %v128_v48  ;;  %v130_v52 = vmul.f32 %v119_v47, %v119_v47 }
  0xc4   :  { %v131_v54 = vsub.f32 %v129_v51, %v130_v52 }
  0xc6   :  { %v132_v56 = vmax.f32 %v131_v54, 0.0 }
  0xc8   :  { %v134_v57 = vadd.f32 1e-05, %v132_v56 }
  0xca   :  { %265 = vrsqrt.f32 %v134_v57  ;;  %vm141_vm1 = vweird.f32 %v134_v57 }
  0xd0   :  { %v266_v58 = vpop.eup %265 }
  0xd1   :  { %v136_v59 = vmul.f32 %v266_v58, %v134_v57  ;;  %vm142_vm0 = vweird.f32 %v266_v58 }
  0xd2   :  { %vm143_vm2 = vmor %vm141_vm1, %vm142_vm0 }
  0xd3   :  { %v137_v60 = vmul.f32 %v266_v58, %v136_v59 }
  0xd5   :  { %v138_v61 = vmul.f32 0.5, %v137_v60 }
  0xd7   :  { %v139_v62 = vsub.f32 1.5, %v138_v61 }
  0xd9   :  { %v140_v0 = vmul.f32 %v266_v58, %v139_v62 }
  0xdb   :  { %v144_v1 = vsel %vm143_vm2, %v266_v58, %v140_v0 }
  0xdc   :  { %v145_v2 = vmul.f32 %v144_v1, %v133_v63 }
  0xde   :  { %v150_v4 = vperm.slane %v145_v2, 0  ;;  %v147_v5 = vmul.f32 %v145_v2, %v119_v47 }
  0xe0   :  { %v148_v6 = vsub.f32 %v146_v3, %v147_v5  ;;  %v153_v7 = vmul.f32 %v150_v4, %v432_v25  ;;  %v152_v8 = vmul.f32 %v150_v4, %v428_v21 }
  0xe2   :  { %v155_v9 = vperm.slane %v148_v6, 0 }
  0xe4   :  { %v157_v10 = vadd.f32 %v155_v9, %v152_v8  ;;  %v158_v11 = vadd.f32 %v155_v9, %v153_v7 }
  0xe6   :  { %v159_v12 = vmax.f32 %v157_v10, 0.0  ;;  %v160_v13 = vmax.f32 %v158_v11, 0.0 }
  0xe8   :  { %197 = vmatmul.f32.vlgmr.msra.gmra.mxu1 %v159_v12  ;;  %200 = vmatmul.f32.vlgmr.msra.gmra.mxu3 %v160_v13 }
 0x165   :  { %v198_v15 = vpop.f32.mrf.mxu1 }
 0x166   :  { %v199_v16 = vadd.f32 %v264_v14, %v198_v15 }
 0x168   :  { %204 = vst [vmem:[#allocation8] sm:$0xff] %v199_v16 }
 0x16b   :  { %v201_v17 = vpop.f32.mrf.mxu3 }
 0x16c   :  { %v202_v18 = vadd.f32 %v264_v14, %v201_v17 }
 0x16e   :  { %205 = vst [vmem:[#allocation8 + $0x8] sm:$0xff] %v202_v18 }
 0x16f   :  { %218 = dma.vmem_to_hbm [thread:$0]  %s211_s16, 256, %s213_s19, [#allocation4], %s370_s29, %s370_s29, %s371_s30  }
 0x170   :  { %367 = dma.done.wait [#allocation4], 256  }
 0x171   :  { %368 = vsyncadd [#allocation4], 4294967040 }
 0x172   :  { %223 = vsyncpa [#allocation3], 1 }
 0x173   :  { %224 = vsyncpa [#allocation6], 1 }
 0x174   :  { %225 = vsyncpa [#allocation4], 1 }

</bundles_post_ra>
